<compile_context>
chip_gen: v5e
topology: v5e:2x2
jax: 0.10.0
libtpu: 0.0.40
codegen_flags: <defaults>
</compile_context>

<pallas_src>
import functools

import jax
import jax.numpy as jnp
from jax.experimental import pallas as pl
from jax.experimental.pallas import tpu as pltpu


# ----------------------------------------------------------------------------
# Pallas kernel
# ----------------------------------------------------------------------------
def _mha_fused_kernel(x_ref, wqkv_ref, wproj_ref, bproj_ref, o_ref, *,
                      num_heads, scale):
    """Fused MHA for one batch element.

    x_ref     : (1, L, D)  f32   current batch element
    wqkv_ref  : (D, 3D)    bf16  QKV weight, columns ordered (K=3, H, dh)
    wproj_ref : (D, D)     bf16  output-projection weight
    bproj_ref : (1, D)     f32   output-projection bias
    o_ref     : (1, L, D)  f32
    """
    _, L, D = x_ref.shape
    dh = D // num_heads

    x = x_ref[0].astype(jnp.bfloat16)                               # (L, D)

    # --- QKV: one full-width MXU matmul, f32 accumulation. qkv_bias=False. ---
    qkv = jnp.dot(x, wqkv_ref[...],
                  preferred_element_type=jnp.float32)               # (L, 3D)

    # torch column order 'B L (K H D)': [0:D]=q, [D:2D]=k, [2D:3D]=v,
    # each block head-major (head h -> columns h*dh : (h+1)*dh).
    q = qkv[:, :D] * scale            # softmax scale folded into q once
    k = qkv[:, D:2 * D]
    v = qkv[:, 2 * D:]

    # --- Per-head attention core (contraction over dh is inherent to MHA). ---
    # Static loop over H heads, 2D static lane slices only (no 3D
    # reshape/transpose relayouts); results lane-packed back into (L, D).
    head_out = []
    for h in range(num_heads):
        lo, hi = h * dh, (h + 1) * dh
        qh, kh, vh = q[:, lo:hi], k[:, lo:hi], v[:, lo:hi]          # (L, dh)
        s = jnp.einsum("qd,kd->qk", qh, kh,
                       preferred_element_type=jnp.float32)          # (L, L)
        s = s - jnp.max(s, axis=-1, keepdims=True)
        p = jnp.exp(s)
        p = p / jnp.sum(p, axis=-1, keepdims=True)  # exact softmax (torch parity)
        # attn_drop is identity (p=0.0 / eval).
        head_out.append(jnp.dot(p, vh,
                                preferred_element_type=jnp.float32))  # (L, dh)
    a_slab = jnp.concatenate(head_out, axis=-1).astype(jnp.bfloat16)  # (L, D)

    # --- Output projection: one (L, D) @ (D, D) matmul + bias. proj_drop id. ---
    y = jnp.dot(a_slab, wproj_ref[...],
                preferred_element_type=jnp.float32)                 # (L, D)
    o_ref[0] = y + bproj_ref[...]                                   # lane-dense store


# ----------------------------------------------------------------------------
# Wrapper
# ----------------------------------------------------------------------------
def attention_forward(x, qkv_w, proj_w, proj_b, *, num_heads):
    """Forward of the PyTorch `Attention` module ('math' path, eval mode).

    x      : (B, L, D)  f32
    qkv_w  : (D, 3*D)   (in, out) layout, i.e. qkv(x) = x @ qkv_w (bias-free),
                        output columns ordered (K=3, H, dh)
    proj_w : (D, D)     proj(a) = a @ proj_w + proj_b
    proj_b : (D,)
    """
    B, L, D = x.shape
    dh = D // num_heads
    scale = dh ** -0.5

    # Weight prep (constant-folded under jit): bf16 for MXU-native operands,
    # halved DMA bytes / VMEM footprint. Accumulation stays f32 in the kernel.
    wqkv = qkv_w.astype(jnp.bfloat16)                      # (D, 3D)
    wproj = proj_w.astype(jnp.bfloat16)                    # (D, D)
    bproj = proj_b.reshape(1, D).astype(jnp.float32)       # (1, D)

    return pl.pallas_call(
        functools.partial(_mha_fused_kernel, num_heads=num_heads, scale=scale),
        out_shape=jax.ShapeDtypeStruct((B, L, D), jnp.float32),
        grid=(B,),
        in_specs=[
            pl.BlockSpec((1, L, D), lambda b: (b, 0, 0)),
            pl.BlockSpec((D, 3 * D), lambda b: (0, 0)),
            pl.BlockSpec((D, D), lambda b: (0, 0)),
            pl.BlockSpec((1, D), lambda b: (0, 0)),
        ],
        out_specs=pl.BlockSpec((1, L, D), lambda b: (b, 0, 0)),
        # "parallel": shards the B=2 batch elements across v7x's 2 TCs; costs
        # only one extra ~0.35us grid step on single-TC v5e/v6e.
        compiler_params=pltpu.CompilerParams(dimension_semantics=("parallel",)),
    )(x, wqkv, wproj, bproj)


# ----------------------------------------------------------------------------
# Pure-JAX reference (mirrors the torch 'math' branch exactly)
# ----------------------------------------------------------------------------
def attention_reference(x, qkv_w, proj_w, proj_b, num_heads):
    B, L, D = x.shape
    dh = D // num_heads
    scale = dh ** -0.5
    qkv = x @ qkv_w                                                     # (B, L, 3D)
    qkv = qkv.reshape(B, L, 3, num_heads, dh).transpose(2, 0, 3, 1, 4)  # (3,B,H,L,dh)
    q, k, v = qkv[0], qkv[1], qkv[2]
    attn = jnp.einsum("bhqd,bhkd->bhqk", q, k) * scale
    attn = jax.nn.softmax(attn, axis=-1)
    a = jnp.einsum("bhqk,bhkd->bhqd", attn, v)
    a = a.transpose(0, 2, 1, 3).reshape(B, L, D)
    return a @ proj_w + proj_b[None, None, :]


# ----------------------------------------------------------------------------
# Main
# ----------------------------------------------------------------------------
if __name__ == "__main__":
    key = jax.random.PRNGKey(0)
    B, L, D, H = 2, 25, 32, 4   # dim=32, num_heads=4 -> head_dim=8; L=25 (UViT-style)

    kx, kq, kp, kb = jax.random.split(key, 4)
    x = jax.random.normal(kx, (B, L, D), jnp.float32)
    qkv_w = jax.random.normal(kq, (D, 3 * D), jnp.float32) * 0.02
    proj_w = jax.random.normal(kp, (D, D), jnp.float32) * 0.02
    proj_b = jax.random.normal(kb, (D,), jnp.float32) * 0.02

    fwd = jax.jit(functools.partial(attention_forward, num_heads=H))
    out = fwd(x, qkv_w, proj_w, proj_b)
    jax.block_until_ready(out)

    ref = attention_reference(x, qkv_w, proj_w, proj_b, H)
    assert out.shape == (B, L, D) and out.dtype == jnp.float32
    assert bool(jnp.all(jnp.isfinite(out)))
    assert bool(jnp.allclose(out, ref, rtol=1e-2, atol=1e-3))
    print("KERNEL_OK")
</pallas_src>

<mosaic_0001>
module attributes {stable_mosaic.version = 11 : i64} {
  func.func @_mha_fused_kernel(%arg0: i32, %arg1: memref<1x25x32xf32, #tpu.memory_space<vmem>>, %arg2: memref<32x96xbf16, #tpu.memory_space<vmem>>, %arg3: memref<32x32xbf16, #tpu.memory_space<vmem>>, %arg4: memref<1x32xf32, #tpu.memory_space<vmem>>, %arg5: memref<1x25x32xf32, #tpu.memory_space<vmem>>) attributes {dimension_semantics = [#tpu.dimension_semantics<parallel>], iteration_bounds = array<i64: 2>, scalar_prefetch = 0 : i64, scratch_operands = 0 : i64, tpu.core_type = #tpu.core_type<tc>, window_params = [{transform_indices = @transform_0, window_bounds = array<i64: 1, 25, 32>}, {pipeline_mode = #tpu.pipeline_mode<synchronous>, transform_indices = @transform_1, window_bounds = array<i64: 32, 96>}, {pipeline_mode = #tpu.pipeline_mode<synchronous>, transform_indices = @transform_2, window_bounds = array<i64: 32, 32>}, {pipeline_mode = #tpu.pipeline_mode<synchronous>, transform_indices = @transform_3, window_bounds = array<i64: 1, 32>}, {transform_indices = @transform_4, window_bounds = array<i64: 1, 25, 32>}]} {
    %c0 = arith.constant 0 : index
    %c0_0 = arith.constant 0 : index
    %c0_1 = arith.constant 0 : index
    %0 = vector.load %arg1[%c0, %c0_0, %c0_1] : memref<1x25x32xf32, #tpu.memory_space<vmem>>, vector<1x25x32xf32>
    %1 = vector.shape_cast %0 : vector<1x25x32xf32> to vector<25x32xf32>
    %2 = arith.truncf %1 : vector<25x32xf32> to vector<25x32xbf16>
    %c0_2 = arith.constant 0 : index
    %c0_3 = arith.constant 0 : index
    %3 = vector.load %arg2[%c0_2, %c0_3] : memref<32x96xbf16, #tpu.memory_space<vmem>>, vector<32x96xbf16>
    %cst = arith.constant dense<0.000000e+00> : vector<25x96xf32>
    %4 = tpu.matmul %2, %3, %cst {dimension_numbers = #tpu.dot_dimension_numbers<[1], [0], [0], [1], [0, 0, 1, 1], [], []>} : vector<25x32xbf16>, vector<32x96xbf16>, vector<25x96xf32> -> vector<25x96xf32>
    %5 = vector.extract_strided_slice %4 {offsets = [0, 0], sizes = [25, 32], strides = [1, 1]} : vector<25x96xf32> to vector<25x32xf32>
    %cst_4 = arith.constant 0.353553385 : f32
    %6 = vector.broadcast %cst_4 : f32 to vector<25x32xf32>
    %7 = arith.mulf %5, %6 : vector<25x32xf32>
    %8 = vector.extract_strided_slice %4 {offsets = [0, 32], sizes = [25, 32], strides = [1, 1]} : vector<25x96xf32> to vector<25x32xf32>
    %9 = vector.extract_strided_slice %4 {offsets = [0, 64], sizes = [25, 32], strides = [1, 1]} : vector<25x96xf32> to vector<25x32xf32>
    %10 = vector.extract_strided_slice %7 {offsets = [0, 0], sizes = [25, 8], strides = [1, 1]} : vector<25x32xf32> to vector<25x8xf32>
    %11 = vector.extract_strided_slice %8 {offsets = [0, 0], sizes = [25, 8], strides = [1, 1]} : vector<25x32xf32> to vector<25x8xf32>
    %12 = vector.extract_strided_slice %9 {offsets = [0, 0], sizes = [25, 8], strides = [1, 1]} : vector<25x32xf32> to vector<25x8xf32>
    "tpu.trace_start"() <{level = 10 : i32, message = "qd,kd->qk"}> : () -> ()
    %cst_5 = arith.constant dense<0.000000e+00> : vector<25x25xf32>
    %13 = tpu.matmul %10, %11, %cst_5 {dimension_numbers = #tpu.dot_dimension_numbers<[1], [1], [0], [0], [0, 0, 1, 0], [], []>} : vector<25x8xf32>, vector<25x8xf32>, vector<25x25xf32> -> vector<25x25xf32>
    "tpu.trace_stop"() : () -> ()
    %cst_6 = arith.constant dense<0xFF800000> : vector<25xf32>
    %14 = vector.multi_reduction <maximumf>, %13, %cst_6 [1] : vector<25x25xf32> to vector<25xf32>
    %15 = vector.shape_cast %14 : vector<25xf32> to vector<25x1xf32>
    %16 = vector.broadcast %15 : vector<25x1xf32> to vector<25x25xf32>
    %17 = arith.subf %13, %16 : vector<25x25xf32>
    %18 = math.exp %17 : vector<25x25xf32>
    %cst_7 = arith.constant dense<0.000000e+00> : vector<25xf32>
    %19 = vector.multi_reduction <add>, %18, %cst_7 [1] : vector<25x25xf32> to vector<25xf32>
    %20 = vector.shape_cast %19 : vector<25xf32> to vector<25x1xf32>
    %21 = vector.broadcast %20 : vector<25x1xf32> to vector<25x25xf32>
    %22 = arith.divf %18, %21 : vector<25x25xf32>
    %cst_8 = arith.constant dense<0.000000e+00> : vector<25x8xf32>
    %23 = tpu.matmul %22, %12, %cst_8 {dimension_numbers = #tpu.dot_dimension_numbers<[1], [0], [0], [1], [0, 0, 1, 1], [], []>} : vector<25x25xf32>, vector<25x8xf32>, vector<25x8xf32> -> vector<25x8xf32>
    %24 = vector.extract_strided_slice %7 {offsets = [0, 8], sizes = [25, 8], strides = [1, 1]} : vector<25x32xf32> to vector<25x8xf32>
    %25 = vector.extract_strided_slice %8 {offsets = [0, 8], sizes = [25, 8], strides = [1, 1]} : vector<25x32xf32> to vector<25x8xf32>
    %26 = vector.extract_strided_slice %9 {offsets = [0, 8], sizes = [25, 8], strides = [1, 1]} : vector<25x32xf32> to vector<25x8xf32>
    "tpu.trace_start"() <{level = 10 : i32, message = "qd,kd->qk"}> : () -> ()
    %cst_9 = arith.constant dense<0.000000e+00> : vector<25x25xf32>
    %27 = tpu.matmul %24, %25, %cst_9 {dimension_numbers = #tpu.dot_dimension_numbers<[1], [1], [0], [0], [0, 0, 1, 0], [], []>} : vector<25x8xf32>, vector<25x8xf32>, vector<25x25xf32> -> vector<25x25xf32>
    "tpu.trace_stop"() : () -> ()
    %cst_10 = arith.constant dense<0xFF800000> : vector<25xf32>
    %28 = vector.multi_reduction <maximumf>, %27, %cst_10 [1] : vector<25x25xf32> to vector<25xf32>
    %29 = vector.shape_cast %28 : vector<25xf32> to vector<25x1xf32>
    %30 = vector.broadcast %29 : vector<25x1xf32> to vector<25x25xf32>
    %31 = arith.subf %27, %30 : vector<25x25xf32>
    %32 = math.exp %31 : vector<25x25xf32>
    %cst_11 = arith.constant dense<0.000000e+00> : vector<25xf32>
    %33 = vector.multi_reduction <add>, %32, %cst_11 [1] : vector<25x25xf32> to vector<25xf32>
    %34 = vector.shape_cast %33 : vector<25xf32> to vector<25x1xf32>
    %35 = vector.broadcast %34 : vector<25x1xf32> to vector<25x25xf32>
    %36 = arith.divf %32, %35 : vector<25x25xf32>
    %cst_12 = arith.constant dense<0.000000e+00> : vector<25x8xf32>
    %37 = tpu.matmul %36, %26, %cst_12 {dimension_numbers = #tpu.dot_dimension_numbers<[1], [0], [0], [1], [0, 0, 1, 1], [], []>} : vector<25x25xf32>, vector<25x8xf32>, vector<25x8xf32> -> vector<25x8xf32>
    %38 = vector.extract_strided_slice %7 {offsets = [0, 16], sizes = [25, 8], strides = [1, 1]} : vector<25x32xf32> to vector<25x8xf32>
    %39 = vector.extract_strided_slice %8 {offsets = [0, 16], sizes = [25, 8], strides = [1, 1]} : vector<25x32xf32> to vector<25x8xf32>
    %40 = vector.extract_strided_slice %9 {offsets = [0, 16], sizes = [25, 8], strides = [1, 1]} : vector<25x32xf32> to vector<25x8xf32>
    "tpu.trace_start"() <{level = 10 : i32, message = "qd,kd->qk"}> : () -> ()
    %cst_13 = arith.constant dense<0.000000e+00> : vector<25x25xf32>
    %41 = tpu.matmul %38, %39, %cst_13 {dimension_numbers = #tpu.dot_dimension_numbers<[1], [1], [0], [0], [0, 0, 1, 0], [], []>} : vector<25x8xf32>, vector<25x8xf32>, vector<25x25xf32> -> vector<25x25xf32>
    "tpu.trace_stop"() : () -> ()
    %cst_14 = arith.constant dense<0xFF800000> : vector<25xf32>
    %42 = vector.multi_reduction <maximumf>, %41, %cst_14 [1] : vector<25x25xf32> to vector<25xf32>
    %43 = vector.shape_cast %42 : vector<25xf32> to vector<25x1xf32>
    %44 = vector.broadcast %43 : vector<25x1xf32> to vector<25x25xf32>
    %45 = arith.subf %41, %44 : vector<25x25xf32>
    %46 = math.exp %45 : vector<25x25xf32>
    %cst_15 = arith.constant dense<0.000000e+00> : vector<25xf32>
    %47 = vector.multi_reduction <add>, %46, %cst_15 [1] : vector<25x25xf32> to vector<25xf32>
    %48 = vector.shape_cast %47 : vector<25xf32> to vector<25x1xf32>
    %49 = vector.broadcast %48 : vector<25x1xf32> to vector<25x25xf32>
    %50 = arith.divf %46, %49 : vector<25x25xf32>
    %cst_16 = arith.constant dense<0.000000e+00> : vector<25x8xf32>
    %51 = tpu.matmul %50, %40, %cst_16 {dimension_numbers = #tpu.dot_dimension_numbers<[1], [0], [0], [1], [0, 0, 1, 1], [], []>} : vector<25x25xf32>, vector<25x8xf32>, vector<25x8xf32> -> vector<25x8xf32>
    %52 = vector.extract_strided_slice %7 {offsets = [0, 24], sizes = [25, 8], strides = [1, 1]} : vector<25x32xf32> to vector<25x8xf32>
    %53 = vector.extract_strided_slice %8 {offsets = [0, 24], sizes = [25, 8], strides = [1, 1]} : vector<25x32xf32> to vector<25x8xf32>
    %54 = vector.extract_strided_slice %9 {offsets = [0, 24], sizes = [25, 8], strides = [1, 1]} : vector<25x32xf32> to vector<25x8xf32>
    "tpu.trace_start"() <{level = 10 : i32, message = "qd,kd->qk"}> : () -> ()
    %cst_17 = arith.constant dense<0.000000e+00> : vector<25x25xf32>
    %55 = tpu.matmul %52, %53, %cst_17 {dimension_numbers = #tpu.dot_dimension_numbers<[1], [1], [0], [0], [0, 0, 1, 0], [], []>} : vector<25x8xf32>, vector<25x8xf32>, vector<25x25xf32> -> vector<25x25xf32>
    "tpu.trace_stop"() : () -> ()
    %cst_18 = arith.constant dense<0xFF800000> : vector<25xf32>
    %56 = vector.multi_reduction <maximumf>, %55, %cst_18 [1] : vector<25x25xf32> to vector<25xf32>
    %57 = vector.shape_cast %56 : vector<25xf32> to vector<25x1xf32>
    %58 = vector.broadcast %57 : vector<25x1xf32> to vector<25x25xf32>
    %59 = arith.subf %55, %58 : vector<25x25xf32>
    %60 = math.exp %59 : vector<25x25xf32>
    %cst_19 = arith.constant dense<0.000000e+00> : vector<25xf32>
    %61 = vector.multi_reduction <add>, %60, %cst_19 [1] : vector<25x25xf32> to vector<25xf32>
    %62 = vector.shape_cast %61 : vector<25xf32> to vector<25x1xf32>
    %63 = vector.broadcast %62 : vector<25x1xf32> to vector<25x25xf32>
    %64 = arith.divf %60, %63 : vector<25x25xf32>
    %cst_20 = arith.constant dense<0.000000e+00> : vector<25x8xf32>
    %65 = tpu.matmul %64, %54, %cst_20 {dimension_numbers = #tpu.dot_dimension_numbers<[1], [0], [0], [1], [0, 0, 1, 1], [], []>} : vector<25x25xf32>, vector<25x8xf32>, vector<25x8xf32> -> vector<25x8xf32>
    %66 = tpu.concatenate %23, %37, %51, %65 in 1 : vector<25x8xf32>, vector<25x8xf32>, vector<25x8xf32>, vector<25x8xf32> -> vector<25x32xf32>
    %67 = arith.truncf %66 : vector<25x32xf32> to vector<25x32xbf16>
    %c0_21 = arith.constant 0 : index
    %c0_22 = arith.constant 0 : index
    %68 = vector.load %arg3[%c0_21, %c0_22] : memref<32x32xbf16, #tpu.memory_space<vmem>>, vector<32x32xbf16>
    %cst_23 = arith.constant dense<0.000000e+00> : vector<25x32xf32>
    %69 = tpu.matmul %67, %68, %cst_23 {dimension_numbers = #tpu.dot_dimension_numbers<[1], [0], [0], [1], [0, 0, 1, 1], [], []>} : vector<25x32xbf16>, vector<32x32xbf16>, vector<25x32xf32> -> vector<25x32xf32>
    %c0_24 = arith.constant 0 : index
    %c0_25 = arith.constant 0 : index
    %70 = vector.load %arg4[%c0_24, %c0_25] : memref<1x32xf32, #tpu.memory_space<vmem>>, vector<1x32xf32>
    %71 = vector.broadcast %70 : vector<1x32xf32> to vector<25x32xf32>
    %72 = arith.addf %69, %71 : vector<25x32xf32>
    %c0_26 = arith.constant 0 : index
    %c0_27 = arith.constant 0 : index
    %c0_28 = arith.constant 0 : index
    %73 = vector.load %arg5[%c0_26, %c0_27, %c0_28] : memref<1x25x32xf32, #tpu.memory_space<vmem>>, vector<1x25x32xf32>
    %74 = vector.shape_cast %73 : vector<1x25x32xf32> to vector<25x32xf32>
    %75 = vector.shape_cast %72 : vector<25x32xf32> to vector<1x25x32xf32>
    tpu.vector_store %arg5[%c0_26, %c0_27, %c0_28], %75 {strides = array<i32>} : memref<1x25x32xf32, #tpu.memory_space<vmem>>, vector<1x25x32xf32>,
    return
  }
  func.func @transform_0(%arg0: i32) -> (i32, i32, i32) {
    %c0_i32 = arith.constant 0 : i32
    %c0_i32_0 = arith.constant 0 : i32
    %c0_i32_1 = arith.constant 0 : i32
    return %arg0, %c0_i32, %c0_i32_0 : i32, i32, i32
  }
  func.func @transform_1(%arg0: i32) -> (i32, i32) {
    %c0_i32 = arith.constant 0 : i32
    %c0_i32_0 = arith.constant 0 : i32
    %c0_i32_1 = arith.constant 0 : i32
    return %c0_i32, %c0_i32_0 : i32, i32
  }
  func.func @transform_2(%arg0: i32) -> (i32, i32) {
    %c0_i32 = arith.constant 0 : i32
    %c0_i32_0 = arith.constant 0 : i32
    %c0_i32_1 = arith.constant 0 : i32
    return %c0_i32, %c0_i32_0 : i32, i32
  }
  func.func @transform_3(%arg0: i32) -> (i32, i32) {
    %c0_i32 = arith.constant 0 : i32
    %c0_i32_0 = arith.constant 0 : i32
    %c0_i32_1 = arith.constant 0 : i32
    return %c0_i32, %c0_i32_0 : i32, i32
  }
  func.func @transform_4(%arg0: i32) -> (i32, i32, i32) {
    %c0_i32 = arith.constant 0 : i32
    %c0_i32_0 = arith.constant 0 : i32
    %c0_i32_1 = arith.constant 0 : i32
    return %arg0, %c0_i32, %c0_i32_0 : i32, i32, i32
  }
}

</mosaic_0001>

<bundles_post_ra>
// kernel: attention_forward.1
= control target key start
LH: loop header
LB: loop body
LE: loop exit
PB: predicated region body
PF: predicated region fallthrough
CT: control target
= control target key end

     0   :  { %s1547_s15 = smov 0   ;;  %s1948_s0 = inlined_call_operand.vmem [shape: f32[2,25,32], index: 0, kind: input, shape index: {}]   ;;  %s1949_s1 = inlined_call_operand.vmem [shape: bf16[32,96], index: 1, kind: input, shape index: {}]   ;;  %s1950_s2 = inlined_call_operand.vmem [shape: bf16[32,32], index: 2, kind: input, shape index: {}]   ;;  %s1951_s3 = inlined_call_operand.vmem [shape: f32[1,32], index: 3, kind: input, shape index: {}]   ;;  %s1952_s4 = inlined_call_operand.vmem [shape: f32[2,25,32], index: 4, kind: output, shape index: {}]  }
   0x1 LB: > { %s1268_s16 = sadd.s32 4294967295, %s1506_s15   ;;  %p1272_p0 = scmp.ge.s32.totalorder %s1506_s15, 1  ;;  %s1506_s15 = sphi %s1547_s15, %s14_s15  }
   0x2   : > { %p162_p1 = scmp.lt.s32.totalorder %s1506_s15, 3 }
   0x4   : > { %p163_p2 = pnand %p1272_p0, %p162_p1 }
   0x5   : > { %p188_p3 = scmp.lt.s32.totalorder (!%p163_p2), %s1268_s16, 1  ;;  %s1508_s25 = smov (!%p163_p2), 96  }
   0x6   : > { %166 = sbr.rel (%p163_p2) target bundleno = 1674 (0x68a), region = 36  ;;  %s1509_s26 = smov (!%p163_p2), 64  }
   0x7   : > { %s1510_s27 = smov (!%p163_p2), 88   ;;  %s1511_s28 = smov (!%p163_p2), 120  }
   0x8   : > { %s1512_s29 = smov (!%p163_p2), 80   ;;  %s1513_s30 = smov (!%p163_p2), 72  }
   0x9   : > { %s1514_s5 = smov (!%p163_p2), 112   ;;  %s1515_s6 = smov (!%p163_p2), 104  }
   0xa   : > { %s1516_s7 = smov (!%p163_p2), 56   ;;  %s1517_s8 = smov (!%p163_p2), 48  }
   0xb   : > { %v1354_v0 = vld [vmem:[%s1949_s1 + $0x8] sm:$0xff]  ;;  %v1353_v1 = vld [vmem:[%s1949_s1] sm:$0xff]  ;;  %s1958_s16 = smov (!%p188_p3, %s1268_s16), 1  ;;  %vm221_vm0 = vcmask 261120   ;;  %vm434_vm1 = vcmask 1040384   ;;  %vm263_vm2 = vcmask 64512  }
   0xc   : > { %234 = vmatpush.bf16.msra.mxu0 %v1354_v0  ;;  %1357 = vmatpush.bf16.msra.mxu1 %v1354_v0  ;;  %s1351_s21 = sshll.u32 %s1958_s16, 5  ;;  %vm313_vm3 = vcmask 203776   ;;  %vm323_vm4 = vcmask 196608   ;;  %s1518_s9 = smov 40  }
   0xd   : > { %s192_s24 = scalar_lea.vmem %s1948_s0, %s1351_s21  ;;  %s1519_s10 = smov 8  }
   0xe   : > { %v199_v2 = vld [vmem:[%s192_s24] sm:$0xff]  ;;  %v200_v3 = vld [vmem:[%s192_s24 + $0x8] sm:$0xff]  ;;  %v201_v4 = vld [vmem:[%s192_s24 + $0x10] sm:$0xff]  ;;  %s1520_s11 = smov 16   ;;  %s1521_s12 = smov 24  }
   0xf   : > { %v203_v5 = vpack.c.bf16 %v200_v3, %v199_v2  ;;  %v202_v6 = vld [vmem:[%s192_s24 + $0x18] sm:$0x1]  ;;  %s197_s24 = scalar_lea.vmem %s1952_s4, %s1351_s21 }
  0x10   : > { %235 = vmatpush.bf16.msra.mxu0 %v1353_v1  ;;  %1358 = vmatpush.bf16.msra.mxu1 %v1353_v1  ;;  %v204_v7 = vpack.c.bf16 %v202_v6, %v201_v4 }
  0x13   : > { %1285 = vmatmul.msk.bf16.vlgmr.msra.gmra.mxu0 %vm221_vm0, %v203_v5  ;;  %1286 = vmatmul.msk.bf16.vlgmr.msra.gmra.mxu1 %vm221_vm0, %v204_v7 }
  0x90   : > { %v1571_v8 = vpop.f32.mrf.mxu0  ;;  %v1573_v9 = vpop.f32.mrf.mxu1 }
  0x91   : > { %v1604_v21 = vmul.f32 0.35355338, %v1571_v8  ;;  %v1614_v23 = vmul.f32 0.35355338, %v1573_v9 }
  0x98   : > { %v1575_v10 = vpop.f32.mrf.mxu0  ;;  %v1577_v11 = vpop.f32.mrf.mxu1 }
  0x99   : > { %257 = vrot.lane.b32.xlu1 %v1575_v10, %s1508_s25  ;;  %417 = vrot.lane.b32.xlu2 %v1577_v11, %s1509_s26  ;;  %v1585_v12 = vpack.i.bf16 %v1575_v10, %v1573_v9  ;;  %v1609_v22 = vmul.f32 0.35355338, %v1575_v10  ;;  %v1619_v24 = vmul.f32 0.35355338, %v1577_v11 }
  0x9a   : > { %261 = vrot.lane.b32.xlu0 %v1577_v11, %s1508_s25 }
  0xa1   : > { %255 = vrot.lane.b32.xlu1 %v1571_v8, %s1508_s25  ;;  %1386 = vrot.lane.b32.xlu2 %v1585_v12, %s1509_s26 }
  0xa2   : > { %259 = vrot.lane.b32.xlu0 %v1573_v9, %s1508_s25 }
  0xa9   : > { %480 = vrot.lane.b32.xlu1 %v1577_v11, %s1510_s27  ;;  %478 = vrot.lane.b32.xlu2 %v1573_v9, %s1510_s27 }
  0xb1   : > { %476 = vrot.lane.b32.xlu2 %v1575_v10, %s1510_s27 }
  0xf3   : > { %v418_v13 = vpop.permute.xlu2 %417 }
  0xf4   : > { %1295 = vmatpush.msk.msra.mxu2 %vm434_vm1, %v418_v13  ;;  %1359 = vmatpush.msk.msra.mxu3 %vm434_vm1, %v418_v13 }
  0xfb   : > { %v1387_v14 = vpop.permute.xlu2 %1386 }
  0xfc   : > { %v1388_v15 = vunpack.i.l.bf16 %v1387_v14  ;;  %v1389_v16 = vunpack.i.h.bf16 %v1387_v14 }
  0xfe   : > { %450 = vmatpush.msra.mxu2 %v1388_v15  ;;  %1360 = vmatpush.msra.mxu3 %v1388_v15 }
 0x100   : > { %451 = vmatpush.msra.mxu2 %v1389_v16  ;;  %1361 = vmatpush.msra.mxu3 %v1389_v16 }
 0x103   : > { %v479_v33 = vpop.permute.xlu2 %478 }
 0x10b   : > { %v258_v18 = vpop.permute.xlu1 %257  ;;  %v477_v37 = vpop.permute.xlu2 %476 }
 0x10c   : > { %v262_v17 = vpop.permute.xlu0 %261 }
 0x10d   : > { %1287 = vmatpush.xpose.msk.msrb.mxu1 %vm263_vm2, %v262_v17 }
 0x113   : > { %v256_v20 = vpop.permute.xlu1 %255 }
 0x114   : > { %v260_v19 = vpop.permute.xlu0 %259 }
 0x115   : > { %1288 = vmatpush.xpose.msk.msrb.mxu1 %vm263_vm2, %v260_v19 }
 0x119   : > { %1289 = vmatpush.xpose.msk.msrb.mxu1 %vm263_vm2, %v258_v18 }
 0x11b   : > { %v481_v40 = vpop.permute.xlu1 %480 }
 0x11d   : > { %1290 = vmatpush.xpose.msk.msrb.mxu1 %vm263_vm2, %v256_v20 }
 0x120   : > { %1291 = vmatmul.msk.f32.vlgmr.msrb.gmra.mxu1 %vm263_vm2, %v1604_v21 }
 0x128   : > { %1292 = vmatmul.msk.f32.gmra.mxu1 %vm263_vm2, %v1609_v22 }
 0x130   : > { %1293 = vmatmul.msk.f32.gmra.mxu1 %vm263_vm2, %v1614_v23 }
 0x138   : > { %1294 = vmatmul.msk.f32.gmra.mxu1 %vm263_vm2, %v1619_v24 }
 0x19d   : > { %v301_v25 = vpop.f32.mrf.mxu1 }
 0x19e   : > { %v314_v26 = vsel %vm313_vm3, %v301_v25, -inf }
 0x19f   : > { %315 = vmax.xlane.f32.xlu0 %v314_v26 }
 0x1a5   : > { %v1624_v27 = vpop.f32.mrf.mxu1 }
 0x1a6   : > { %v317_v28 = vsel %vm313_vm3, %v1624_v27, -inf }
 0x1a7   : > { %318 = vmax.xlane.f32.xlu1 %v317_v28 }
 0x1ad   : > { %v307_v29 = vpop.f32.mrf.mxu1 }
 0x1ae   : > { %v320_v30 = vsel %vm313_vm3, %v307_v29, -inf }
 0x1af   : > { %321 = vmax.xlane.f32.xlu2 %v320_v30 }
 0x1b3   : > { %411 = vrot.lane.b32.xlu0 %v1571_v8, %s1509_s26 }
 0x1b5   : > { %v310_v31 = vpop.f32.mrf.mxu1 }
 0x1b6   : > { %v324_v32 = vsel %vm323_vm4, %v310_v31, -inf }
 0x1b7   : > { %325 = vmax.xlane.f32.xlu2 %v324_v32 }
 0x1c0   : > { %466 = vrot.lane.b32.xlu1 %v1604_v21, %s1511_s28 }
 0x1c8   : > { %468 = vrot.lane.b32.xlu1 %v1609_v22, %s1511_s28 }
 0x1d0   : > { %470 = vrot.lane.b32.xlu1 %v1614_v23, %s1511_s28 }
 0x1d8   : > { %691 = vrot.lane.b32.xlu1 %v1577_v11, %s1512_s29 }
 0x1e0   : > { %902 = vrot.lane.b32.xlu1 %v1577_v11, %s1513_s30 }
 0x1e8   : > { %900 = vrot.lane.b32.xlu1 %v1573_v9, %s1513_s30 }
 0x1f0   : > { %687 = vrot.lane.b32.xlu1 %v1575_v10, %s1512_s29 }
 0x1f8   : > { %898 = vrot.lane.b32.xlu1 %v1575_v10, %s1513_s30 }
 0x200   : > { %896 = vrot.lane.b32.xlu1 %v1571_v8, %s1513_s30 }
 0x208   : > { %679 = vrot.lane.b32.xlu1 %v1609_v22, %s1514_s5 }
 0x210   : > { %892 = vrot.lane.b32.xlu1 %v1614_v23, %s1515_s6 }
 0x212   : > { %v316_v34 = vpop.xlane.xlu0 %315 }
 0x213   : > { %v327_v35 = vsub.f32 %v301_v25, %v316_v34 }
 0x215   : > { %v331_v36 = vmul.f32 1.442695, %v327_v35 }
 0x217   : > { %1436 = vpow2.f32 %v331_v36 }
 0x218   : > { %1391 = vrot.lane.b32.xlu1 %v1585_v12, %s1516_s7 }
 0x21a   : > { %v319_v45 = vpop.xlane.xlu1 %318 }
 0x21b   : > { %v328_v57 = vsub.f32 %v1624_v27, %v319_v45 }
 0x21d   : > { %v1652_v38 = vpop.eup %1436  ;;  %v333_v58 = vmul.f32 1.442695, %v328_v57 }
 0x21e   : > { %v339_v39 = vsel %vm313_vm3, %v1652_v38, 0.0 }
 0x21f   : > { %340 = vadd.xlane.f32.xlu0 %v339_v39 }
 0x222   : > { %v322_v41 = vpop.xlane.xlu2 %321 }
 0x223   : > { %v329_v42 = vsub.f32 %v307_v29, %v322_v41 }
 0x225   : > { %v335_v43 = vmul.f32 1.442695, %v329_v42  ;;  %v412_v44 = vpop.permute.xlu0 %411 }
 0x226   : > { %452 = vmatpush.msra.mxu2 %v412_v44  ;;  %1362 = vmatpush.msra.mxu3 %v412_v44 }
 0x227   : > { %1438 = vpow2.f32 %v335_v43 }
 0x228   : > { %1300 = vmatpush.xpose.msk.msrb.mxu3 %vm263_vm2, %v481_v40 }
 0x22a   : > { %v326_v46 = vpop.xlane.xlu2 %325 }
 0x22b   : > { %v330_v47 = vsub.f32 %v310_v31, %v326_v46 }
 0x22c   : > { %1301 = vmatpush.xpose.msk.msrb.mxu3 %vm263_vm2, %v479_v33 }
 0x22d   : > { %v1658_v48 = vpop.eup %1438  ;;  %v337_v49 = vmul.f32 1.442695, %v330_v47 }
 0x22e   : > { %v345_v50 = vsel %vm313_vm3, %v1658_v48, 0.0 }
 0x22f   : > { %1440 = vpow2.f32 %v337_v49  ;;  %346 = vadd.xlane.f32.xlu2 %v345_v50 }
 0x230   : > { %1302 = vmatpush.xpose.msk.msrb.mxu3 %vm263_vm2, %v477_v37  ;;  %1442 = vpow2.f32 %v333_v58 }
 0x232   : > { %v1663_v51 = vpop.permute.xlu1 %466 }
 0x233   : > { %689 = vrot.lane.b32.xlu0 %v1573_v9, %s1512_s29 }
 0x235   : > { %v1667_v52 = vpop.eup %1440 }
 0x236   : > { %v348_v53 = vsel %vm323_vm4, %v1667_v52, 0.0  ;;  %v1689_v59 = vpop.eup %1442 }
 0x237   : > { %349 = vadd.xlane.f32.xlu2 %v348_v53  ;;  %v342_v60 = vsel %vm313_vm3, %v1689_v59, 0.0 }
 0x23a   : > { %v1671_v54 = vpop.permute.xlu1 %468 }
 0x23b   : > { %685 = vrot.lane.b32.xlu0 %v1571_v8, %s1512_s29 }
 0x242   : > { %v1675_v55 = vpop.permute.xlu1 %470 }
 0x243   : > { %677 = vrot.lane.b32.xlu0 %v1604_v21, %s1514_s5 }
 0x24a   : > { %v692_v56 = vpop.permute.xlu1 %691 }
 0x24b   : > { %890 = vrot.lane.b32.xlu0 %v1609_v22, %s1515_s6  ;;  %1313 = vmatpush.xpose.msk.msrb.mxu2 %vm263_vm2, %v692_v56 }
 0x24f   : > { %474 = vrot.lane.b32.xlu2 %v1571_v8, %s1510_s27 }
 0x252   : > { %v903_v62 = vpop.permute.xlu1 %902 }
 0x253   : > { %683 = vrot.lane.b32.xlu0 %v1619_v24, %s1514_s5 }
 0x25a   : > { %v901_v5 = vpop.permute.xlu1 %900 }
 0x25b   : > { %623 = vrot.lane.b32.xlu0 %v1571_v8, %s1516_s7 }
 0x262   : > { %v688_v17 = vpop.permute.xlu1 %687 }
 0x26a   : > { %v899_v37 = vpop.permute.xlu1 %898 }
 0x272   : > { %v897_v43 = vpop.permute.xlu1 %896 }
 0x278   : > { %343 = vadd.xlane.f32.xlu2 %v342_v60 }
 0x27a   : > { %v680_v58 = vpop.permute.xlu1 %679 }
 0x290   : > { %472 = vrot.lane.b32.xlu2 %v1619_v24, %s1511_s28 }
 0x292   : > { %v341_v61 = vpop.xlane.xlu0 %340 }
 0x293   : > { %1444 = vrcp.f32 %v341_v61  ;;  %v362_v2 = vand.u32 2147483648, %v341_v61  ;;  %v360_v4 = vand.u32 2147483647, %v341_v61  ;;  %vm356_vm6 = vweird.f32 %v341_v61 }
 0x295   : > { %v363_v7 = vor.u32 1.1754944e-38, %v362_v2  ;;  %vm361_vm8 = vcmp.eq.f32.partialorder %v360_v4, 8.507059e+37 }
 0x298   : > { %888 = vrot.lane.b32.xlu2 %v1604_v21, %s1515_s6 }
 0x299   : > { %v1445_v63 = vpop.eup %1444 }
 0x29a   : > { %v352_v0 = vmul.f32 %v1445_v63, %v341_v61  ;;  %vm357_vm5 = vweird.f32 %v1445_v63 }
 0x29b   : > { %vm358_vm7 = vmor %vm356_vm6, %vm357_vm5 }
 0x29c   : > { %v353_v1 = vsub.f32 1.0, %v352_v0 }
 0x29e   : > { %v354_v3 = vmul.f32 %v1445_v63, %v353_v1 }
 0x2a0   : > { %681 = vrot.lane.b32.xlu2 %v1614_v23, %s1514_s5  ;;  %v355_v6 = vadd.f32 %v1445_v63, %v354_v3 }
 0x2a2   : > { %v347_v9 = vpop.xlane.xlu2 %346  ;;  %v359_v10 = vsel %vm358_vm7, %v1445_v63, %v355_v6  ;;  %v893_v63 = vpop.permute.xlu1 %892 }
 0x2a3   : > { %1446 = vrcp.f32 %v347_v9  ;;  %v364_v13 = vsel %vm361_vm8, %v363_v7, %v359_v10  ;;  %v392_v21 = vand.u32 2147483648, %v347_v9  ;;  %v390_v25 = vand.u32 2147483647, %v347_v9 }
 0x2a4   : > { %v365_v14 = vmul.f32 %v1652_v38, %v364_v13  ;;  %vm386_vm10 = vweird.f32 %v347_v9 }
 0x2a5   : > { %v690_v15 = vpop.permute.xlu0 %689  ;;  %v393_v27 = vor.u32 1.1754944e-38, %v392_v21  ;;  %vm391_vm12 = vcmp.eq.f32.partialorder %v390_v25, 8.507059e+37 }
 0x2a6   : > { %1296 = vmatmul.msk.f32.vlgmr.msra.gmra.mxu2 %vm313_vm3, %v365_v14 }
 0x2a7   : > { %1314 = vmatpush.xpose.msk.msrb.mxu2 %vm263_vm2, %v690_v15 }
 0x2a8   : > { %894 = vrot.lane.b32.xlu2 %v1619_v24, %s1515_s6 }
 0x2a9   : > { %v1447_v16 = vpop.eup %1446 }
 0x2aa   : > { %v382_v18 = vmul.f32 %v1447_v16, %v347_v9  ;;  %v350_v19 = vpop.xlane.xlu2 %349  ;;  %vm387_vm9 = vweird.f32 %v1447_v16  ;;  %v1392_v2 = vpop.permute.xlu1 %1391 }
 0x2ab   : > { %1315 = vmatpush.xpose.msk.msrb.mxu2 %vm263_vm2, %v688_v17  ;;  %1448 = vrcp.f32 %v350_v19  ;;  %vm388_vm11 = vmor %vm386_vm10, %vm387_vm9  ;;  %v407_v34 = vand.u32 2147483648, %v350_v19  ;;  %v405_v36 = vand.u32 2147483647, %v350_v19  ;;  %vm401_vm14 = vweird.f32 %v350_v19 }
 0x2ac   : > { %v383_v20 = vsub.f32 1.0, %v382_v18  ;;  %v1394_v4 = vunpack.i.h.bf16 %v1392_v2 }
 0x2ad   : > { %v686_v22 = vpop.permute.xlu0 %685  ;;  %v408_v39 = vor.u32 1.1754944e-38, %v407_v34  ;;  %vm406_vm5 = vcmp.eq.f32.partialorder %v405_v36, 8.507059e+37 }
 0x2ae   : > { %v384_v23 = vmul.f32 %v1447_v16, %v383_v20 }
 0x2af   : > { %1316 = vmatpush.xpose.msk.msrb.mxu2 %vm263_vm2, %v686_v22 }
 0x2b0   : > { %629 = vrot.lane.b32.xlu2 %v1577_v11, %s1516_s7  ;;  %v385_v24 = vadd.f32 %v1447_v16, %v384_v23 }
 0x2b1   : > { %v1449_v26 = vpop.eup %1448 }
 0x2b2   : > { %v397_v28 = vmul.f32 %v1449_v26, %v350_v19  ;;  %v475_v29 = vpop.permute.xlu2 %474  ;;  %v389_v30 = vsel %vm388_vm11, %v1447_v16, %v385_v24  ;;  %vm402_vm13 = vweird.f32 %v1449_v26 }
 0x2b3   : > { %1303 = vmatpush.xpose.msk.msrb.mxu3 %vm263_vm2, %v475_v29  ;;  %v394_v31 = vsel %vm391_vm12, %v393_v27, %v389_v30  ;;  %vm403_vm15 = vmor %vm401_vm14, %vm402_vm13 }
 0x2b4   : > { %v398_v32 = vsub.f32 1.0, %v397_v28  ;;  %v395_v33 = vmul.f32 %v1658_v48, %v394_v31 }
 0x2b5   : > { %v678_v53 = vpop.permute.xlu0 %677 }
 0x2b6   : > { %v399_v35 = vmul.f32 %v1449_v26, %v398_v32  ;;  %1298 = vmatmul.msk.f32.vlgmr.msra.gmra.mxu3 %vm313_vm3, %v395_v33 }
 0x2b7   : > { %1326 = vmatpush.xpose.msk.msra.mxu3 %vm263_vm2, %v903_v62 }
 0x2b8   : > { %840 = vrot.lane.b32.xlu2 %v1577_v11, %s1517_s8  ;;  %v400_v38 = vadd.f32 %v1449_v26, %v399_v35 }
 0x2ba   : > { %v404_v40 = vsel %vm403_vm15, %v1449_v26, %v400_v38 }
 0x2bb   : > { %1327 = vmatpush.xpose.msk.msra.mxu3 %vm263_vm2, %v901_v5  ;;  %v409_v41 = vsel %vm406_vm5, %v408_v39, %v404_v40 }
 0x2bc   : > { %v410_v42 = vmul.f32 %v1667_v52, %v409_v41 }
 0x2bd   : > { %v891_v61 = vpop.permute.xlu0 %890 }
 0x2be   : > { %1299 = vmatmul.msk.f32.gmra.mxu3 %vm313_vm3, %v410_v42 }
 0x2bf   : > { %1328 = vmatpush.xpose.msk.msra.mxu3 %vm263_vm2, %v899_v37 }
 0x2c3   : > { %1329 = vmatpush.xpose.msk.msra.mxu3 %vm263_vm2, %v897_v43 }
 0x2c5   : > { %v684_v1 = vpop.permute.xlu0 %683 }
 0x2c6   : > { %1304 = vmatmul.msk.f32.vlgmr.msrb.gmra.mxu3 %vm263_vm2, %v1663_v51 }
 0x2cd   : > { %v624_v5 = vpop.permute.xlu0 %623 }
 0x2ce   : > { %1305 = vmatmul.msk.f32.gmra.mxu3 %vm263_vm2, %v1671_v54 }
 0x2d6   : > { %1306 = vmatmul.msk.f32.gmra.mxu3 %vm263_vm2, %v1675_v55 }
 0x2eb   : > { %v344_v44 = vpop.xlane.xlu2 %343 }
 0x2ec   : > { %1450 = vrcp.f32 %v344_v44  ;;  %v377_v49 = vand.u32 2147483648, %v344_v44  ;;  %v375_v52 = vand.u32 2147483647, %v344_v44  ;;  %vm371_vm7 = vweird.f32 %v344_v44 }
 0x2ee   : > { %v378_v56 = vor.u32 1.1754944e-38, %v377_v49  ;;  %vm376_vm9 = vcmp.eq.f32.partialorder %v375_v52, 8.507059e+37 }
 0x2f2   : > { %v1451_v45 = vpop.eup %1450 }
 0x2f3   : > { %v367_v46 = vmul.f32 %v1451_v45, %v344_v44  ;;  %v473_v47 = vpop.permute.xlu2 %472  ;;  %vm372_vm6 = vweird.f32 %v1451_v45 }
 0x2f4   : > { %1307 = vmatmul.msk.f32.gmra.mxu3 %vm263_vm2, %v473_v47  ;;  %vm373_vm8 = vmor %vm371_vm7, %vm372_vm6 }
 0x2f5   : > { %v368_v48 = vsub.f32 1.0, %v367_v46 }
 0x2f7   : > { %v369_v50 = vmul.f32 %v1451_v45, %v368_v48 }
 0x2f9   : > { %v370_v51 = vadd.f32 %v1451_v45, %v369_v50 }
 0x2fb   : > { %v889_v54 = vpop.permute.xlu2 %888  ;;  %v374_v57 = vsel %vm373_vm8, %v1451_v45, %v370_v51 }
 0x2fc   : > { %1330 = vmatmul.msk.f32.vlgmr.msra.gmra.mxu3 %vm263_vm2, %v889_v54  ;;  %v379_v55 = vsel %vm376_vm9, %v378_v56, %v374_v57 }
 0x2fd   : > { %v380_v60 = vmul.f32 %v1689_v59, %v379_v55  ;;  %v1393_v59 = vunpack.i.l.bf16 %v1392_v2 }
 0x2ff   : > { %1297 = vmatmul.msk.f32.gmra.mxu2 %vm313_vm3, %v380_v60 }
 0x303   : > { %v682_v62 = vpop.permute.xlu2 %681 }
 0x304   : > { %1331 = vmatmul.msk.f32.gmra.mxu3 %vm263_vm2, %v891_v61 }
 0x307   : > { %1317 = vmatmul.msk.f32.vlgmr.msrb.gmra.mxu2 %vm263_vm2, %v678_v53 }
 0x30b   : > { %v895_v0 = vpop.permute.xlu2 %894 }
 0x30c   : > { %1332 = vmatmul.msk.f32.gmra.mxu3 %vm263_vm2, %v893_v63 }
 0x30f   : > { %1318 = vmatmul.msk.f32.gmra.mxu2 %vm263_vm2, %v680_v58 }
 0x313   : > { %v630_v3 = vpop.permute.xlu2 %629 }
 0x314   : > { %1308 = vmatpush.msk.msrb.mxu0 %vm434_vm1, %v630_v3  ;;  %1333 = vmatmul.msk.f32.gmra.mxu3 %vm263_vm2, %v895_v0 }
 0x316   : > { %661 = vmatpush.msrb.mxu0 %v1393_v59 }
 0x317   : > { %1319 = vmatmul.msk.f32.gmra.mxu2 %vm263_vm2, %v682_v62 }
 0x318   : > { %662 = vmatpush.msrb.mxu0 %v1394_v4 }
 0x31a   : > { %663 = vmatpush.msrb.mxu0 %v624_v5 }
 0x31b   : > { %v841_v6 = vpop.permute.xlu2 %840 }
 0x31c   : > { %1321 = vmatpush.msk.msra.mxu1 %vm434_vm1, %v841_v6 }
 0x31f   : > { %1320 = vmatmul.msk.f32.gmra.mxu2 %vm263_vm2, %v684_v1 }
 0x329   : > { %v1742_v14 = vpop.f32.mrf.mxu2 }
 0x339   : > { %v1738_v7 = vpop.f32.mrf.mxu3 }
 0x341   : > { %v1740_v9 = vpop.f32.mrf.mxu3 }
 0x349   : > { %v515_v10 = vpop.f32.mrf.mxu3 }
 0x34a   : > { %v527_v26 = vsel %vm313_vm3, %v515_v10, -inf }
 0x351   : > { %v518_v13 = vpop.f32.mrf.mxu3 }
 0x352   : > { %v530_v22 = vsel %vm313_vm3, %v518_v13, -inf }
 0x359   : > { %v1744_v15 = vpop.f32.mrf.mxu3 }
 0x35a   : > { %v533_v34 = vsel %vm313_vm3, %v1744_v15, -inf }
 0x377   : > { %v524_v17 = vpop.f32.mrf.mxu3 }
 0x378   : > { %v536_v30 = vsel %vm323_vm4, %v524_v17, -inf }
 0x37f   : > { %v1749_v20 = vpop.f32.mrf.mxu3 }
 0x380   : > { %v949_v37 = vsel %vm313_vm3, %v1749_v20, -inf }
 0x382   : > { %v1746_v16 = vpop.f32.mrf.mxu2 }
 0x387   : > { %v1753_v25 = vpop.f32.mrf.mxu3 }
 0x388   : > { %v952_v27 = vsel %vm313_vm3, %v1753_v25, -inf }
 0x38a   : > { %v726_v18 = vpop.f32.mrf.mxu2 }
 0x38b   : > { %v738_v19 = vsel %vm313_vm3, %v726_v18, -inf }
 0x38c   : > { %739 = vmax.xlane.f32.xlu0 %v738_v19 }
 0x38f   : > { %v1767_v32 = vpop.f32.mrf.mxu3 }
 0x390   : > { %v955_v33 = vsel %vm313_vm3, %v1767_v32, -inf }
 0x392   : > { %v729_v21 = vpop.f32.mrf.mxu2 }
 0x393   : > { %v741_v23 = vsel %vm313_vm3, %v729_v21, -inf }
 0x394   : > { %531 = vmax.xlane.f32.xlu0 %v530_v22  ;;  %742 = vmax.xlane.f32.xlu1 %v741_v23 }
 0x397   : > { %v1773_v35 = vpop.f32.mrf.mxu3 }
 0x398   : > { %v958_v36 = vsel %vm323_vm4, %v1773_v35, -inf }
 0x39a   : > { %v1755_v24 = vpop.f32.mrf.mxu2 }
 0x39b   : > { %v744_v28 = vsel %vm313_vm3, %v1755_v24, -inf }
 0x39c   : > { %528 = vmax.xlane.f32.xlu1 %v527_v26  ;;  %953 = vmax.xlane.f32.xlu0 %v952_v27 }
 0x39d   : > { %745 = vmax.xlane.f32.xlu2 %v744_v28 }
 0x3a2   : > { %v1762_v29 = vpop.f32.mrf.mxu2 }
 0x3a3   : > { %v747_v31 = vsel %vm323_vm4, %v1762_v29, -inf }
 0x3a4   : > { %537 = vmax.xlane.f32.xlu1 %v536_v30 }
 0x3a5   : > { %748 = vmax.xlane.f32.xlu2 %v747_v31 }
 0x3ac   : > { %956 = vmax.xlane.f32.xlu1 %v955_v33 }
 0x3ad   : > { %534 = vmax.xlane.f32.xlu2 %v533_v34 }
 0x3b4   : > { %959 = vmax.xlane.f32.xlu1 %v958_v36 }
 0x3b5   : > { %950 = vmax.xlane.f32.xlu2 %v949_v37 }
 0x3ff   : > { %v740_v38 = vpop.xlane.xlu0 %739 }
 0x400   : > { %v750_v39 = vsub.f32 %v726_v18, %v740_v38 }
 0x402   : > { %v754_v40 = vmul.f32 1.442695, %v750_v39 }
 0x404   : > { %1452 = vpow2.f32 %v754_v40 }
 0x407   : > { %v743_v41 = vpop.xlane.xlu1 %742  ;;  %v532_v46 = vpop.xlane.xlu0 %531 }
 0x408   : > { %v751_v42 = vsub.f32 %v729_v21, %v743_v41  ;;  %v540_v50 = vsub.f32 %v518_v13, %v532_v46 }
 0x40a   : > { %v1779_v43 = vpop.eup %1452  ;;  %v756_v44 = vmul.f32 1.442695, %v751_v42  ;;  %v545_v56 = vmul.f32 1.442695, %v540_v50 }
 0x40b   : > { %v762_v45 = vsel %vm313_vm3, %v1779_v43, 0.0 }
 0x40c   : > { %763 = vadd.xlane.f32.xlu1 %v762_v45  ;;  %1454 = vpow2.f32 %v756_v44 }
 0x40f   : > { %v529_v47 = vpop.xlane.xlu1 %528  ;;  %v954_v18 = vpop.xlane.xlu0 %953 }
 0x410   : > { %v539_v48 = vsub.f32 %v515_v10, %v529_v47  ;;  %v746_v49 = vpop.xlane.xlu2 %745  ;;  %v962_v19 = vsub.f32 %v1753_v25, %v954_v18 }
 0x411   : > { %v752_v28 = vsub.f32 %v1755_v24, %v746_v49 }
 0x412   : > { %v543_v52 = vmul.f32 1.442695, %v539_v48  ;;  %v1783_v53 = vpop.eup %1454 }
 0x413   : > { %v765_v51 = vsel %vm313_vm3, %v1783_v53, 0.0 }
 0x414   : > { %1456 = vpow2.f32 %v543_v52  ;;  %766 = vadd.xlane.f32.xlu2 %v765_v51 }
 0x415   : > { %1458 = vpow2.f32 %v545_v56 }
 0x417   : > { %v538_v54 = vpop.xlane.xlu1 %537 }
 0x418   : > { %v542_v57 = vsub.f32 %v524_v17, %v538_v54  ;;  %v749_v55 = vpop.xlane.xlu2 %748 }
 0x419   : > { %v753_v30 = vsub.f32 %v1762_v29, %v749_v55 }
 0x41a   : > { %v1787_v58 = vpop.eup %1456  ;;  %v549_v60 = vmul.f32 1.442695, %v542_v57 }
 0x41b   : > { %v551_v61 = vsel %vm313_vm3, %v1787_v58, 0.0  ;;  %v1791_v62 = vpop.eup %1458 }
 0x41c   : > { %1460 = vpow2.f32 %v549_v60  ;;  %552 = vadd.xlane.f32.xlu0 %v551_v61  ;;  %v554_v3 = vsel %vm313_vm3, %v1791_v62, 0.0 }
 0x41f   : > { %v957_v21 = vpop.xlane.xlu1 %956 }
 0x420   : > { %v535_v63 = vpop.xlane.xlu2 %534  ;;  %v963_v22 = vsub.f32 %v1767_v32, %v957_v21  ;;  %v760_v32 = vmul.f32 1.442695, %v753_v30 }
 0x421   : > { %v541_v0 = vsub.f32 %v1744_v15, %v535_v63 }
 0x422   : > { %v1794_v1 = vpop.eup %1460  ;;  %v969_v23 = vmul.f32 1.442695, %v963_v22 }
 0x423   : > { %v547_v2 = vmul.f32 1.442695, %v541_v0  ;;  %v560_v59 = vsel %vm323_vm4, %v1794_v1, 0.0 }
 0x424   : > { %555 = vadd.xlane.f32.xlu0 %v554_v3  ;;  %561 = vadd.xlane.f32.xlu2 %v560_v59 }
 0x425   : > { %1462 = vpow2.f32 %v547_v2  ;;  %1396 = vrot.lane.b32.xlu1 %v1585_v12, %s1517_s8 }
 0x427   : > { %v960_v31 = vpop.xlane.xlu1 %959 }
 0x428   : > { %v951_v4 = vpop.xlane.xlu2 %950 }
 0x429   : > { %v961_v5 = vsub.f32 %v1749_v20, %v951_v4  ;;  %v967_v20 = vmul.f32 1.442695, %v962_v19 }
 0x42b   : > { %v1803_v6 = vpop.eup %1462  ;;  %v965_v10 = vmul.f32 1.442695, %v961_v5 }
 0x42c   : > { %v557_v13 = vsel %vm313_vm3, %v1803_v6, 0.0 }
 0x42d   : > { %1464 = vpow2.f32 %v965_v10  ;;  %558 = vadd.xlane.f32.xlu0 %v557_v13 }
 0x42e   : > { %1466 = vpow2.f32 %v967_v20 }
 0x42f   : > { %1468 = vpow2.f32 %v969_v23 }
 0x433   : > { %v1807_v15 = vpop.eup %1464 }
 0x434   : > { %v973_v17 = vsel %vm313_vm3, %v1807_v15, 0.0  ;;  %v1817_v26 = vpop.eup %1466 }
 0x435   : > { %974 = vadd.xlane.f32.xlu0 %v973_v17  ;;  %v1822_v25 = vpop.eup %1468 }
 0x436   : > { %v979_v27 = vsel %vm313_vm3, %v1822_v25, 0.0 }
 0x43c   : > { %1401 = vrot.lane.b32.xlu2 %v1585_v12, %s1518_s9  ;;  %v976_v12 = vsel %vm313_vm3, %v1817_v26, 0.0 }
 0x444   : > { %834 = vrot.lane.b32.xlu2 %v1571_v8, %s1517_s8 }
 0x449   : > { %1051 = vrot.lane.b32.xlu0 %v1577_v11, %s1518_s9  ;;  %v758_v11 = vmul.f32 1.442695, %v752_v28 }
 0x44b   : > { %1470 = vpow2.f32 %v758_v11 }
 0x44c   : > { %1045 = vrot.lane.b32.xlu2 %v1571_v8, %s1518_s9  ;;  %v964_v8 = vsub.f32 %v1773_v35, %v960_v31  ;;  %1472 = vpow2.f32 %v760_v32 }
 0x44e   : > { %v971_v33 = vmul.f32 1.442695, %v964_v8 }
 0x44f   : > { %977 = vadd.xlane.f32.xlu1 %v976_v12 }
 0x450   : > { %1474 = vpow2.f32 %v971_v33 }
 0x451   : > { %v1829_v34 = vpop.eup %1470 }
 0x452   : > { %v1831_v36 = vpop.eup %1472  ;;  %v768_v37 = vsel %vm313_vm3, %v1829_v34, 0.0 }
 0x453   : > { %v771_v24 = vsel %vm323_vm4, %v1831_v36, 0.0 }
 0x456   : > { %v1837_v29 = vpop.eup %1474 }
 0x457   : > { %980 = vadd.xlane.f32.xlu1 %v979_v27  ;;  %v982_v35 = vsel %vm323_vm4, %v1837_v29, 0.0 }
 0x473   : > { %769 = vadd.xlane.f32.xlu0 %v768_v37 }
 0x475   : > { %772 = vadd.xlane.f32.xlu2 %v771_v24 }
 0x47b   : > { %983 = vadd.xlane.f32.xlu0 %v982_v35 }
 0x47f   : > { %v764_v38 = vpop.xlane.xlu1 %763 }
 0x480   : > { %1476 = vrcp.f32 %v764_v38  ;;  %vm779_vm12 = vweird.f32 %v764_v38  ;;  %v785_v59 = vand.u32 2147483648, %v764_v38  ;;  %v783_v5 = vand.u32 2147483647, %v764_v38 }
 0x482   : > { %v786_v27 = vor.u32 1.1754944e-38, %v785_v59  ;;  %vm784_vm5 = vcmp.eq.f32.partialorder %v783_v5, 8.507059e+37 }
 0x486   : > { %v1477_v40 = vpop.eup %1476 }
 0x487   : > { %v1841_v39 = vpop.xlane.xlu2 %766  ;;  %v775_v42 = vmul.f32 %v1477_v40, %v764_v38  ;;  %vm780_vm10 = vweird.f32 %v1477_v40 }
 0x488   : > { %1478 = vrcp.f32 %v1841_v39  ;;  %vm1851_vm15 = vmor %vm779_vm12, %vm780_vm10  ;;  %v800_v37 = vand.u32 2147483648, %v1841_v39  ;;  %vm794_vm9 = vweird.f32 %v1841_v39  ;;  %v798_v35 = vand.u32 2147483647, %v1841_v39 }
 0x489   : > { %v776_v45 = vsub.f32 1.0, %v775_v42 }
 0x48a   : > { %vm799_vm12 = vcmp.eq.f32.partialorder %v798_v35, 8.507059e+37 }
 0x48b   : > { %v777_v51 = vmul.f32 %v1477_v40, %v776_v45 }
 0x48d   : > { %v778_v0 = vadd.f32 %v1477_v40, %v777_v51  ;;  %v801_v51 = vor.u32 1.1754944e-38, %v800_v37 }
 0x48e   : > { %v1844_v44 = vpop.eup %1478 }
 0x48f   : > { %v553_v41 = vpop.xlane.xlu0 %552  ;;  %v790_v50 = vmul.f32 %v1844_v44, %v1841_v39  ;;  %v782_v23 = vsel %vm1851_vm15, %v1477_v40, %v778_v0  ;;  %vm795_vm7 = vweird.f32 %v1844_v44 }
 0x490   : > { %1480 = vrcp.f32 %v553_v41  ;;  %v572_v57 = vand.u32 2147483647, %v553_v41  ;;  %v574_v55 = vand.u32 2147483648, %v553_v41  ;;  %vm568_vm11 = vweird.f32 %v553_v41 }
 0x491   : > { %v791_v63 = vsub.f32 1.0, %v790_v50  ;;  %v787_v32 = vsel %vm784_vm5, %v786_v27, %v782_v23 }
 0x492   : > { %v575_v4 = vor.u32 1.1754944e-38, %v574_v55  ;;  %vm573_vm14 = vcmp.eq.f32.partialorder %v572_v57, 8.507059e+37  ;;  %v788_v40 = vmul.f32 %v1779_v43, %v787_v32 }
 0x493   : > { %v792_v18 = vmul.f32 %v1844_v44, %v791_v63 }
 0x495   : > { %v793_v33 = vadd.f32 %v1844_v44, %v792_v18 }
 0x496   : > { %v1481_v46 = vpop.eup %1480 }
 0x497   : > { %v564_v47 = vmul.f32 %v1481_v46, %v553_v41  ;;  %v556_v48 = vpop.xlane.xlu0 %555  ;;  %v1397_v49 = vpop.permute.xlu1 %1396  ;;  %vm569_vm4 = vweird.f32 %v1481_v46 }
 0x498   : > { %1482 = vrcp.f32 %v556_v48  ;;  %v1848_v52 = vpop.xlane.xlu2 %561  ;;  %v1398_v54 = vunpack.i.l.bf16 %v1397_v49  ;;  %v1399_v61 = vunpack.i.h.bf16 %v1397_v49  ;;  %vm570_vm13 = vmor %vm568_vm11, %vm569_vm4  ;;  %v589_v28 = vand.u32 2147483648, %v556_v48 }
 0x499   : > { %v565_v56 = vsub.f32 1.0, %v564_v47  ;;  %1484 = vrcp.f32 %v1848_v52  ;;  %v587_v31 = vand.u32 2147483647, %v556_v48  ;;  %vm583_vm8 = vweird.f32 %v556_v48  ;;  %vm1872_vm11 = vmor %vm794_vm9, %vm795_vm7 }
 0x49a   : > { %872 = vmatpush.msra.mxu1 %v1398_v54  ;;  %v797_v50 = vsel %vm1872_vm11, %v1844_v44, %v793_v33  ;;  %v619_v59 = vand.u32 2147483648, %v1848_v52  ;;  %vm613_vm7 = vweird.f32 %v1848_v52 }
 0x49b   : > { %v566_v60 = vmul.f32 %v1481_v46, %v565_v56  ;;  %vm588_vm10 = vcmp.eq.f32.partialorder %v587_v31, 8.507059e+37  ;;  %v802_v54 = vsel %vm799_vm12, %v801_v51, %v797_v50 }
 0x49c   : > { %873 = vmatpush.msra.mxu1 %v1399_v61  ;;  %v803_v0 = vmul.f32 %v1783_v53, %v802_v54  ;;  %v617_v53 = vand.u32 2147483647, %v1848_v52  ;;  %v620_v18 = vor.u32 1.1754944e-38, %v619_v59 }
 0x49d   : > { %v567_v2 = vadd.f32 %v1481_v46, %v566_v60 }
 0x49e   : > { %v1483_v3 = vpop.eup %1482  ;;  %vm618_vm9 = vcmp.eq.f32.partialorder %v617_v53, 8.507059e+37 }
 0x49f   : > { %v579_v10 = vmul.f32 %v1483_v3, %v556_v48  ;;  %v571_v13 = vsel %vm570_vm13, %v1481_v46, %v567_v2  ;;  %v1858_v22 = vpop.eup %1484  ;;  %vm584_vm6 = vweird.f32 %v1483_v3 }
 0x4a0   : > { %v559_v19 = vpop.xlane.xlu0 %558  ;;  %v1856_v20 = vpop.permute.xlu2 %1401  ;;  %v576_v21 = vsel %vm573_vm14, %v575_v4, %v571_v13  ;;  %v609_v8 = vmul.f32 %v1858_v22, %v1848_v52  ;;  %vm585_vm4 = vmor %vm583_vm8, %vm584_vm6  ;;  %vm614_vm5 = vweird.f32 %v1858_v22 }
 0x4a1   : > { %v580_v12 = vsub.f32 1.0, %v579_v10  ;;  %1486 = vrcp.f32 %v559_v19  ;;  %v577_v30 = vmul.f32 %v1787_v58, %v576_v21  ;;  %v590_v58 = vor.u32 1.1754944e-38, %v589_v28  ;;  %vm615_vm8 = vmor %vm613_vm7, %vm614_vm5 }
 0x4a2   : > { %v610_v45 = vsub.f32 1.0, %v609_v8  ;;  %v604_v56 = vand.u32 2147483648, %v559_v19  ;;  %v602_v60 = vand.u32 2147483647, %v559_v19  ;;  %vm598_vm14 = vweird.f32 %v559_v19 }
 0x4a3   : > { %v581_v11 = vmul.f32 %v1483_v3, %v580_v12  ;;  %1309 = vmatmul.msk.f32.vlgmr.msrb.gmra.mxu0 %vm313_vm3, %v577_v30  ;;  %v1403_v52 = vunpack.i.l.bf16 %v1856_v20 }
 0x4a4   : > { %v611_v57 = vmul.f32 %v1858_v22, %v610_v45  ;;  %v605_v63 = vor.u32 1.1754944e-38, %v604_v56  ;;  %vm603_vm6 = vcmp.eq.f32.partialorder %v602_v60, 8.507059e+37 }
 0x4a5   : > { %v582_v24 = vadd.f32 %v1483_v3, %v581_v11 }
 0x4a7   : > { %v1487_v38 = vpop.eup %1486  ;;  %v586_v41 = vsel %vm585_vm4, %v1483_v3, %v582_v24  ;;  %v612_v3 = vadd.f32 %v1858_v22, %v611_v57 }
 0x4a8   : > { %v594_v46 = vmul.f32 %v1487_v38, %v559_v19  ;;  %v975_v47 = vpop.xlane.xlu0 %974  ;;  %v835_v48 = vpop.permute.xlu2 %834  ;;  %v591_v49 = vsel %vm588_vm10, %v590_v58, %v586_v41  ;;  %vm599_vm13 = vweird.f32 %v1487_v38 }
 0x4a9   : > { %1488 = vrcp.f32 %v975_v47  ;;  %874 = vmatpush.msra.mxu1 %v835_v48  ;;  %v592_v43 = vmul.f32 %v1791_v62, %v591_v49  ;;  %vm600_vm15 = vmor %vm598_vm14, %vm599_vm13  ;;  %v616_v17 = vsel %vm615_vm8, %v1858_v22, %v612_v3  ;;  %v996_v23 = vand.u32 2147483648, %v975_v47 }
 0x4aa   : > { %v595_v39 = vsub.f32 1.0, %v594_v46  ;;  %1322 = vmatmul.msk.f32.vlgmr.msra.gmra.mxu1 %vm313_vm3, %v788_v40  ;;  %v621_v19 = vsel %vm618_vm9, %v620_v18, %v616_v17  ;;  %vm990_vm10 = vweird.f32 %v975_v47  ;;  %v994_v12 = vand.u32 2147483647, %v975_v47 }
 0x4ab   : > { %1310 = vmatmul.msk.f32.gmra.mxu0 %vm313_vm3, %v592_v43  ;;  %v622_v27 = vmul.f32 %v1794_v1, %v621_v19  ;;  %v997_v30 = vor.u32 1.1754944e-38, %v996_v23  ;;  %v1404_v22 = vunpack.i.h.bf16 %v1856_v20 }
 0x4ac   : > { %v596_v55 = vmul.f32 %v1487_v38, %v595_v39  ;;  %vm995_vm12 = vcmp.eq.f32.partialorder %v994_v12, 8.507059e+37 }
 0x4ae   : > { %v597_v44 = vadd.f32 %v1487_v38, %v596_v55 }
 0x4af   : > { %v1489_v61 = vpop.eup %1488 }
 0x4b0   : > { %v986_v62 = vmul.f32 %v1489_v61, %v975_v47  ;;  %v601_v2 = vsel %vm600_vm15, %v1487_v38, %v597_v44  ;;  %vm991_vm4 = vweird.f32 %v1489_v61  ;;  %v1046_v31 = vpop.permute.xlu2 %1045 }
 0x4b1   : > { %v606_v4 = vsel %vm603_vm6, %v605_v63, %v601_v2  ;;  %vm992_vm11 = vmor %vm990_vm10, %vm991_vm4 }
 0x4b2   : > { %v987_v5 = vsub.f32 1.0, %v986_v62  ;;  %1323 = vmatmul.msk.f32.gmra.mxu1 %vm313_vm3, %v803_v0  ;;  %v607_v10 = vmul.f32 %v1803_v6, %v606_v4 }
 0x4b4   : > { %v988_v13 = vmul.f32 %v1489_v61, %v987_v5  ;;  %1311 = vmatmul.msk.f32.gmra.mxu0 %vm313_vm3, %v607_v10 }
 0x4b6   : > { %v989_v21 = vadd.f32 %v1489_v61, %v988_v13 }
 0x4b8   : > { %v993_v28 = vsel %vm992_vm11, %v1489_v61, %v989_v21 }
 0x4b9   : > { %v998_v11 = vsel %vm995_vm12, %v997_v30, %v993_v28 }
 0x4ba   : > { %v999_v1 = vmul.f32 %v1807_v15, %v998_v11 }
 0x4bb   : > { %v1052_v6 = vpop.permute.xlu0 %1051 }
 0x4bc   : > { %1312 = vmatmul.msk.f32.gmra.mxu0 %vm313_vm3, %v622_v27 }
 0x4bd   : > { %1334 = vmatpush.msk.msra.mxu0 %vm434_vm1, %v1052_v6 }
 0x4bf   : > { %1083 = vmatpush.msra.mxu0 %v1403_v52 }
 0x4c1   : > { %1084 = vmatpush.msra.mxu0 %v1404_v22 }
 0x4c2   : > { %v978_v32 = vpop.xlane.xlu1 %977 }
 0x4c3   : > { %1085 = vmatpush.msra.mxu0 %v1046_v31  ;;  %1490 = vrcp.f32 %v978_v32  ;;  %v1011_v58 = vand.u32 2147483648, %v978_v32  ;;  %v1009_v20 = vand.u32 2147483647, %v978_v32  ;;  %vm1005_vm13 = vweird.f32 %v978_v32 }
 0x4c4   : > { %1335 = vmatmul.msk.f32.vlgmr.msra.gmra.mxu0 %vm313_vm3, %v999_v1 }
 0x4c5   : > { %v1012_v41 = vor.u32 1.1754944e-38, %v1011_v58  ;;  %vm1010_vm15 = vcmp.eq.f32.partialorder %v1009_v20, 8.507059e+37 }
 0x4c9   : > { %v1491_v8 = vpop.eup %1490 }
 0x4ca   : > { %v1001_v33 = vmul.f32 %v1491_v8, %v978_v32  ;;  %v981_v37 = vpop.xlane.xlu1 %980  ;;  %vm1006_vm1 = vweird.f32 %v1491_v8 }
 0x4cb   : > { %1492 = vrcp.f32 %v981_v37  ;;  %vm1007_vm14 = vmor %vm1005_vm13, %vm1006_vm1  ;;  %v1026_v48 = vand.u32 2147483648, %v981_v37  ;;  %v1024_v50 = vand.u32 2147483647, %v981_v37  ;;  %vm1020_vm6 = vweird.f32 %v981_v37 }
 0x4cc   : > { %v1002_v24 = vsub.f32 1.0, %v1001_v33 }
 0x4cd   : > { %v1027_v39 = vor.u32 1.1754944e-38, %v1026_v48  ;;  %vm1025_vm8 = vcmp.eq.f32.partialorder %v1024_v50, 8.507059e+37  ;;  %v1356_v50 = vld [vmem:[%s1950_s2 + $0x8] sm:$0xff] }
 0x4ce   : > { %v1003_v35 = vmul.f32 %v1491_v8, %v1002_v24  ;;  %1195 = vmatpush.bf16.msra.mxu2 %v1356_v50 }
 0x4d0   : > { %v1004_v38 = vadd.f32 %v1491_v8, %v1003_v35 }
 0x4d1   : > { %v1493_v40 = vpop.eup %1492 }
 0x4d2   : > { %v1016_v42 = vmul.f32 %v1493_v40, %v981_v37  ;;  %v1008_v15 = vsel %vm1007_vm14, %v1491_v8, %v1004_v38  ;;  %vm1021_vm5 = vweird.f32 %v1493_v40 }
 0x4d3   : > { %v1013_v45 = vsel %vm1010_vm15, %v1012_v41, %v1008_v15  ;;  %vm1022_vm7 = vmor %vm1020_vm6, %vm1021_vm5 }
 0x4d4   : > { %v1017_v46 = vsub.f32 1.0, %v1016_v42  ;;  %v1014_v47 = vmul.f32 %v1817_v26, %v1013_v45 }
 0x4d6   : > { %v1018_v49 = vmul.f32 %v1493_v40, %v1017_v46  ;;  %1336 = vmatmul.msk.f32.gmra.mxu0 %vm313_vm3, %v1014_v47 }
 0x4d8   : > { %v1019_v51 = vadd.f32 %v1493_v40, %v1018_v49 }
 0x4da   : > { %v1023_v43 = vsel %vm1022_vm7, %v1493_v40, %v1019_v51  ;;  %v1355_v51 = vld [vmem:[%s1950_s2] sm:$0xff] }
 0x4db   : > { %v1028_v56 = vsel %vm1025_vm8, %v1027_v39, %v1023_v43  ;;  %1196 = vmatpush.bf16.msra.mxu2 %v1355_v51  ;;  %vm1156_vm8 = vcmask 195584  }
 0x4dc   : > { %v1029_v54 = vmul.f32 %v1822_v25, %v1028_v56 }
 0x4de   : > { %1337 = vmatmul.msk.f32.gmra.mxu0 %vm313_vm3, %v1029_v54 }
 0x4e6   : > { %v770_v57 = vpop.xlane.xlu0 %769 }
 0x4e7   : > { %1494 = vrcp.f32 %v770_v57  ;;  %v815_v62 = vand.u32 2147483648, %v770_v57  ;;  %v813_v2 = vand.u32 2147483647, %v770_v57  ;;  %vm809_vm4 = vweird.f32 %v770_v57 }
 0x4e8   : > { %v773_v26 = vpop.xlane.xlu2 %772 }
 0x4e9   : > { %1496 = vrcp.f32 %v773_v26  ;;  %v816_v10 = vor.u32 1.1754944e-38, %v815_v62  ;;  %vm814_vm11 = vcmp.eq.f32.partialorder %v813_v2, 8.507059e+37  ;;  %v830_v18 = vand.u32 2147483648, %v773_v26 }
 0x4ea   : > { %vm824_vm1 = vweird.f32 %v773_v26  ;;  %v828_v12 = vand.u32 2147483647, %v773_v26 }
 0x4eb   : > { %v831_v30 = vor.u32 1.1754944e-38, %v830_v18 }
 0x4ec   : > { %vm829_vm5 = vcmp.eq.f32.partialorder %v828_v12, 8.507059e+37 }
 0x4ed   : > { %v1495_v55 = vpop.eup %1494 }
 0x4ee   : > { %v805_v60 = vmul.f32 %v1495_v55, %v770_v57  ;;  %v984_v44 = vpop.xlane.xlu0 %983  ;;  %vm810_vm9 = vweird.f32 %v1495_v55 }
 0x4ef   : > { %v1497_v61 = vpop.eup %1496  ;;  %1498 = vrcp.f32 %v984_v44  ;;  %vm811_vm10 = vmor %vm809_vm4, %vm810_vm9  ;;  %v1041_v27 = vand.u32 2147483648, %v984_v44  ;;  %v1039_v52 = vand.u32 2147483647, %v984_v44  ;;  %vm1035_vm15 = vweird.f32 %v984_v44 }
 0x4f0   : > { %v806_v63 = vsub.f32 1.0, %v805_v60  ;;  %v820_v0 = vmul.f32 %v1497_v61, %v773_v26  ;;  %vm825_vm12 = vweird.f32 %v1497_v61 }
 0x4f1   : > { %vm826_vm13 = vmor %vm824_vm1, %vm825_vm12  ;;  %v1042_v11 = vor.u32 1.1754944e-38, %v1041_v27  ;;  %vm1040_vm7 = vcmp.eq.f32.partialorder %v1039_v52, 8.507059e+37 }
 0x4f2   : > { %v807_v3 = vmul.f32 %v1495_v55, %v806_v63  ;;  %v821_v59 = vsub.f32 1.0, %v820_v0 }
 0x4f4   : > { %v822_v25 = vmul.f32 %v1497_v61, %v821_v59  ;;  %v808_v4 = vadd.f32 %v1495_v55, %v807_v3 }
 0x4f5   : > { %v1499_v5 = vpop.eup %1498 }
 0x4f6   : > { %v1031_v53 = vmul.f32 %v1499_v5, %v984_v44  ;;  %v812_v13 = vsel %vm811_vm10, %v1495_v55, %v808_v4  ;;  %v823_v17 = vadd.f32 %v1497_v61, %v822_v25  ;;  %vm1036_vm14 = vweird.f32 %v1499_v5 }
 0x4f7   : > { %v817_v19 = vsel %vm814_vm11, %v816_v10, %v812_v13  ;;  %vm1037_vm6 = vmor %vm1035_vm15, %vm1036_vm14 }
 0x4f8   : > { %v1032_v21 = vsub.f32 1.0, %v1031_v53  ;;  %v818_v23 = vmul.f32 %v1829_v34, %v817_v19  ;;  %v827_v28 = vsel %vm826_vm13, %v1497_v61, %v823_v17 }
 0x4f9   : > { %v832_v31 = vsel %vm829_vm5, %v831_v30, %v827_v28  ;;  %v1435_v28 = vld [vmem:[%s1951_s3] ss:$0 sm:$0xff] }
 0x4fa   : > { %v1033_v6 = vmul.f32 %v1499_v5, %v1032_v21  ;;  %1324 = vmatmul.msk.f32.gmra.mxu1 %vm313_vm3, %v818_v23  ;;  %v833_v34 = vmul.f32 %v1831_v36, %v832_v31 }
 0x4fc   : > { %v1034_v22 = vadd.f32 %v1499_v5, %v1033_v6 }
 0x4fe   : > { %v1038_v32 = vsel %vm1037_vm6, %v1499_v5, %v1034_v22 }
 0x4ff   : > { %v1043_v1 = vsel %vm1040_vm7, %v1042_v11, %v1038_v32 }
 0x500   : > { %v1044_v8 = vmul.f32 %v1837_v29, %v1043_v1 }
 0x502   : > { %1325 = vmatmul.msk.f32.gmra.mxu1 %vm313_vm3, %v833_v34  ;;  %1338 = vmatmul.msk.f32.gmra.mxu0 %vm313_vm3, %v1044_v8  ;;  %vm1151_vm3 = vcmask 130048  }
 0x520   : > { %v665_v33 = vpop.f32.mrf.mxu0 }
 0x527   : > { %v876_v37 = vpop.f32.mrf.mxu1 }
 0x528   : > { %v668_v24 = vpop.f32.mrf.mxu0 }
 0x529   : > { %v1405_v58 = vpack.i.bf16 %v668_v24, %v665_v33 }
 0x52b   : > { %1406 = vrot.lane.b32.xlu0 %v1405_v58, %s1519_s10 }
 0x52f   : > { %v879_v35 = vpop.f32.mrf.mxu1 }
 0x530   : > { %v1410_v20 = vpack.i.bf16 %v879_v35, %v876_v37 }
 0x531   : > { %v671_v38 = vpop.f32.mrf.mxu0 }
 0x532   : > { %1411 = vrot.lane.b32.xlu1 %v1410_v20, %s1520_s11 }
 0x539   : > { %v674_v40 = vpop.f32.mrf.mxu0 }
 0x53a   : > { %v1420_v41 = vpack.i.bf16 %v674_v40, %v671_v38 }
 0x53c   : > { %1421 = vrot.lane.b32.xlu0 %v1420_v41, %s1519_s10 }
 0x541   : > { %v1087_v36 = vpop.f32.mrf.mxu0 }
 0x553   : > { %v1090_v29 = vpop.f32.mrf.mxu0 }
 0x554   : > { %v1415_v42 = vpack.i.bf16 %v1090_v29, %v1087_v36 }
 0x556   : > { %1416 = vrot.lane.b32.xlu2 %v1415_v42, %s1521_s12 }
 0x55b   : > { %v1093_v15 = vpop.f32.mrf.mxu0 }
 0x577   : > { %v882_v45 = vpop.f32.mrf.mxu1 }
 0x57f   : > { %v885_v46 = vpop.f32.mrf.mxu1  ;;  %v1096_v47 = vpop.f32.mrf.mxu0 }
 0x580   : > { %v1425_v48 = vpack.i.bf16 %v885_v46, %v882_v45  ;;  %v1430_v49 = vpack.i.bf16 %v1096_v47, %v1093_v15 }
 0x582   : > { %1426 = vrot.lane.b32.xlu1 %v1425_v48, %s1520_s11  ;;  %1431 = vrot.lane.b32.xlu0 %v1430_v49, %s1521_s12 }
 0x59d   : > { %v1407_v39 = vpop.permute.xlu0 %1406 }
 0x59e   : > { %v1409_v56 = vunpack.i.h.bf16 %v1407_v39  ;;  %v1408_v54 = vunpack.i.l.bf16 %v1407_v39 }
 0x5a0   : > { %v1148_v60 = vsel %vm263_vm2, %v1746_v16, %v1409_v56  ;;  %v1147_v44 = vsel %vm263_vm2, %v1742_v14, %v1408_v54 }
 0x5a4   : > { %v1412_v43 = vpop.permute.xlu1 %1411 }
 0x5a5   : > { %v1414_v57 = vunpack.i.h.bf16 %v1412_v43  ;;  %v1413_v26 = vunpack.i.l.bf16 %v1412_v43 }
 0x5a7   : > { %v1153_v0 = vsel %vm1151_vm3, %v1148_v60, %v1414_v57  ;;  %v1152_v62 = vsel %vm1151_vm3, %v1147_v44, %v1413_v26 }
 0x5ae   : > { %v1422_v25 = vpop.permute.xlu0 %1421 }
 0x5af   : > { %v1424_v4 = vunpack.i.h.bf16 %v1422_v25  ;;  %v1423_v5 = vunpack.i.l.bf16 %v1422_v25 }
 0x5b0   : > { %v1417_v55 = vpop.permute.xlu2 %1416 }
 0x5b1   : > { %v1419_v61 = vunpack.i.h.bf16 %v1417_v55  ;;  %v1418_v63 = vunpack.i.l.bf16 %v1417_v55  ;;  %v1150_v18 = vsel %vm263_vm2, %v1740_v9, %v1424_v4  ;;  %v1149_v19 = vsel %vm263_vm2, %v1738_v7, %v1423_v5 }
 0x5b2   : > { %vm1211_vm2 = vcmask 253952  }
 0x5b3   : > { %v1158_v2 = vsel %vm1156_vm8, %v1153_v0, %v1419_v61  ;;  %v1157_v3 = vsel %vm1156_vm8, %v1152_v62, %v1418_v63 }
 0x5b4   : > { %v1161_v59 = vpack.c.bf16 %v1158_v2, %v1157_v3 }
 0x5b6   : > { %1347 = vmatmul.msk.bf16.vlgmr.msra.gmra.mxu2 %vm221_vm0, %v1161_v59 }
 0x5f4   : > { %v1427_v16 = vpop.permute.xlu1 %1426  ;;  %v1432_v10 = vpop.permute.xlu0 %1431 }
 0x5f5   : > { %v1429_v14 = vunpack.i.h.bf16 %v1427_v16  ;;  %v1428_v53 = vunpack.i.l.bf16 %v1427_v16  ;;  %v1434_v13 = vunpack.i.h.bf16 %v1432_v10  ;;  %v1433_v17 = vunpack.i.l.bf16 %v1432_v10 }
 0x5f7   : > { %v1155_v21 = vsel %vm1151_vm3, %v1150_v18, %v1429_v14  ;;  %v1154_v23 = vsel %vm1151_vm3, %v1149_v19, %v1428_v53 }
 0x5f8   : > { %v1159_v12 = vsel %vm1156_vm8, %v1154_v23, %v1433_v17  ;;  %v1160_v27 = vsel %vm1156_vm8, %v1155_v21, %v1434_v13 }
 0x5f9   : > { %v1162_v6 = vpack.c.bf16 %v1160_v27, %v1159_v12 }
 0x5fb   : > { %1348 = vmatmul.msk.bf16.gmra.mxu2 %vm221_vm0, %v1162_v6 }
 0x639   : > { %v1198_v7 = vpop.f32.mrf.mxu2 }
 0x63a   : > { %v1199_v9 = vadd.f32 %v1435_v28, %v1198_v7 }
 0x63c   : > { %1208 = vst.msk [vmem:[%s197_s24] sm:$0xff] %vm221_vm0, %v1199_v9 }
 0x641   : > { %v1200_v52 = vpop.f32.mrf.mxu2 }
 0x642   : > { %v1201_v30 = vadd.f32 %v1435_v28, %v1200_v52 }
 0x644   : > { %1209 = vst.msk [vmem:[%s197_s24 + $0x8] sm:$0xff] %vm221_vm0, %v1201_v30 }
 0x67e   : > { %v1203_v22 = vpop.f32.mrf.mxu2 }
 0x67f   : > { %v1204_v11 = vadd.f32 %v1435_v28, %v1203_v22 }
 0x681   : > { %1210 = vst.msk [vmem:[%s197_s24 + $0x10] sm:$0xff] %vm221_vm0, %v1204_v11 }
 0x686   : > { %v1205_v31 = vpop.f32.mrf.mxu2 }
 0x687   : > { %v1206_v32 = vadd.f32 %v1435_v28, %v1205_v31 }
 0x689   : > { %1212 = vst.msk [vmem:[%s197_s24 + $0x18] sm:$0x1] %vm1211_vm2, %v1206_v32 }
 0x68a PF: > { %s14_s15 = sadd.s32 1, %s1506_s15  }
 0x68b   : > { %p11_p4 = scmp.ge.s32.totalorder %s14_s15, 4  }
 0x68d   :  { %13 = sbr.rel (!%p11_p4) target bundleno = 1 (0x1), region = 66 }

</bundles_post_ra>
